<compile_context>
chip_gen: v5e
topology: v5e:2x2
jax: 0.10.0
libtpu: 0.0.40
codegen_flags: <defaults>
</compile_context>

<pallas_src>
import functools

import jax
import jax.numpy as jnp
import numpy as np
from jax.experimental import pallas as pl
from jax.experimental.pallas import tpu as pltpu


def _bce_loss_kernel(xs_ref, xe_ref, y_ref, out_ref, acc_ref, *,
                     inv_n, inv_d, d, rpl):
    """One grid step: a tile of packed rows for both start and end.

    xs_ref, xe_ref : [BM, 128]      lane-dense packed activations (rpl rows/lane-row)
    y_ref          : [2, BM, rpl]   labels aligned with the packed layout
    out_ref        : [2]            SMEM, (loss_start, loss_end), written last step
    acc_ref        : [2]            SMEM scratch, running BCE sums
    """
    i = pl.program_id(0)

    @pl.when(i == 0)
    def _init():
        acc_ref[0] = jnp.float32(0.0)
        acc_ref[1] = jnp.float32(0.0)

    def tanh_f32(x_ref):
        x = x_ref[...]
        if x.dtype == jnp.bfloat16:
            # v6e/v7x: keep the transcendental in bf16 (EUP bf16), accumulate f32.
            return jnp.tanh(x).astype(jnp.float32)
        # f32 path (also the right choice on v5e, which has no bf16 VPU/EUP).
        return jnp.tanh(x.astype(jnp.float32))

    def row_means(t):
        # [BM, 128] -> [BM, rpl]: each contiguous group of d lanes is one
        # original row; reduce each group and place results side by side so the
        # log pass below is not 1-lane sparse.
        cols = [jnp.sum(t[:, j * d:(j + 1) * d], axis=-1, keepdims=True)
                for j in range(rpl)]
        return jnp.concatenate(cols, axis=-1) * inv_d

    def bce_sum(p, y):
        # PyTorch BCELoss clamps the log terms at -100 (also makes zero-padded
        # rows with y == 0 contribute exactly 0 to the sum).
        log_p = jnp.maximum(jnp.log(p), -100.0)
        log_1mp = jnp.maximum(jnp.log(1.0 - p), -100.0)
        return jnp.sum(-(y * log_p + (1.0 - y) * log_1mp))

    p_s = row_means(tanh_f32(xs_ref))        # [BM, rpl]
    p_e = row_means(tanh_f32(xe_ref))        # [BM, rpl]

    acc_ref[0] += bce_sum(p_s, y_ref[0])
    acc_ref[1] += bce_sum(p_e, y_ref[1])

    @pl.when(i == pl.num_programs(0) - 1)
    def _finalize():
        out_ref[0] = acc_ref[0] * inv_n
        out_ref[1] = acc_ref[1] * inv_n


def bce_loss(start, end, scores, *, block_rows=8192):
    """start/end: [B, T, D]; scores: [B, 2, T]. Returns (loss_start, loss_end)."""
    B, T, D = start.shape
    assert scores.shape == (B, 2, T)
    # TODO(synk): general D (not dividing 128) needs a padded-D / unpacked path.
    assert 128 % D == 0, "lane-dense packing requires D to divide 128"
    rpl = 128 // D                    # original rows packed per 128-lane row
    N = B * T

    # Free reshapes (contiguous) of the big tensors; labels realigned once
    # (tiny [B,2,T] array) so both channels ride in a single contiguous DMA.
    xs = start.reshape(N, D)
    xe = end.reshape(N, D)
    y = jnp.transpose(scores, (1, 0, 2)).reshape(2, N).astype(jnp.float32)

    # Row tile: multiple of rpl*8 so packed blocks satisfy the (8,128) rule.
    min_rows = rpl * 8
    block_rows = max(min_rows, (block_rows // min_rows) * min_rows)
    if N <= block_rows:
        n_pad = pl.cdiv(N, rpl) * rpl     # single full-array block
        tile_rows = n_pad
    else:
        n_pad = pl.cdiv(N, block_rows) * block_rows
        tile_rows = block_rows
    if n_pad != N:
        # Zero activations (tanh=0 -> p=0) with zero labels contribute exactly 0.
        xs = jnp.pad(xs, ((0, n_pad - N), (0, 0)))
        xe = jnp.pad(xe, ((0, n_pad - N), (0, 0)))
        y = jnp.pad(y, ((0, 0), (0, n_pad - N)))

    m_total = n_pad // rpl                # lane-rows in the packed view
    bm = tile_rows // rpl                 # lane-rows per tile (mult. of 8 or full)
    grid = (m_total // bm,)

    xs_ld = xs.reshape(m_total, 128)      # free: contiguous row-major
    xe_ld = xe.reshape(m_total, 128)
    y3 = y.reshape(2, m_total, rpl)

    kernel = functools.partial(_bce_loss_kernel,
                               inv_n=1.0 / N, inv_d=1.0 / D, d=D, rpl=rpl)

    itemsize = jnp.dtype(start.dtype).itemsize
    cost = pl.CostEstimate(
        flops=int(2 * N * D + 10 * N),
        transcendentals=int(2 * N * D + 4 * N),      # tanh + 4 logs per row
        bytes_accessed=int(2 * N * D * itemsize + 2 * N * 4 + 2 * 4),
    )

    out = pl.pallas_call(
        kernel,
        out_shape=jax.ShapeDtypeStruct((2,), jnp.float32),
        grid=grid,
        in_specs=[
            pl.BlockSpec((bm, 128), lambda i: (i, 0)),
            pl.BlockSpec((bm, 128), lambda i: (i, 0)),
            pl.BlockSpec((2, bm, rpl), lambda i: (0, i, 0)),
        ],
        out_specs=pl.BlockSpec(memory_space=pltpu.MemorySpace.SMEM),
        scratch_shapes=[pltpu.SMEM((2,), jnp.float32)],
        compiler_params=pltpu.CompilerParams(
            # Single axis is the loss reduction -> sequential accumulation.
            dimension_semantics=("arbitrary",)),
        cost_estimate=cost,
    )(xs_ld, xe_ld, y3)
    return out[0], out[1]


def _reference(start, end, scores):
    p_start = jnp.mean(jnp.tanh(start.astype(jnp.float32)), axis=-1).reshape(-1)
    p_end = jnp.mean(jnp.tanh(end.astype(jnp.float32)), axis=-1).reshape(-1)
    ys = scores[:, 0, :].reshape(-1).astype(jnp.float32)
    ye = scores[:, 1, :].reshape(-1).astype(jnp.float32)

    def bce(p, y):
        lp = jnp.maximum(jnp.log(p), -100.0)
        l1p = jnp.maximum(jnp.log(1.0 - p), -100.0)
        return jnp.mean(-(y * lp + (1.0 - y) * l1p))

    return bce(p_start, ys), bce(p_end, ye)


if __name__ == "__main__":
    def run_case(B, T, D, case, block_rows):
        key = jax.random.fold_in(jax.random.PRNGKey(0), case)
        k1, k2, k3 = jax.random.split(key, 3)
        # Keep tanh(x).mean(-1) inside (0, 1) so BCE is well defined (PyTorch
        # requires inputs in [0, 1]).
        start = jax.random.uniform(k1, (B, T, D), jnp.float32, minval=0.05, maxval=2.5)
        end = jax.random.uniform(k2, (B, T, D), jnp.float32, minval=0.05, maxval=2.5)
        scores = jax.random.uniform(k3, (B, 2, T), jnp.float32, minval=0.0, maxval=1.0)

        got = bce_loss(start, end, scores, block_rows=block_rows)
        jax.block_until_ready(got)
        want = _reference(start, end, scores)
        np.testing.assert_allclose(np.asarray(got[0]), np.asarray(want[0]),
                                   rtol=1e-4, atol=1e-4)
        np.testing.assert_allclose(np.asarray(got[1]), np.asarray(want[1]),
                                   rtol=1e-4, atol=1e-4)

    # Small shape implied by the module (single block, grid = 1).
    run_case(B=2, T=8, D=32, case=0, block_rows=8192)
    # Larger shape with a small tile override: exercises the multi-step grid,
    # SMEM accumulator init/finalize, and zero-contribution row padding.
    run_case(B=2, T=300, D=32, case=1, block_rows=64)

    print("KERNEL_OK")
</pallas_src>

<mosaic_0001>
module attributes {stable_mosaic.version = 11 : i64} {
  func.func @_bce_loss_kernel(%arg0: i32, %arg1: memref<4x128xf32, #tpu.memory_space<vmem>>, %arg2: memref<4x128xf32, #tpu.memory_space<vmem>>, %arg3: memref<2x4x4xf32, #tpu.memory_space<vmem>>, %arg4: memref<2xf32, #tpu.memory_space<smem>>, %arg5: memref<2xf32, #tpu.memory_space<smem>>) attributes {dimension_semantics = [#tpu.dimension_semantics<arbitrary>], iteration_bounds = array<i64: 1>, scalar_prefetch = 0 : i64, scratch_operands = 1 : i64, tpu.core_type = #tpu.core_type<tc>, window_params = [{transform_indices = @transform_0, window_bounds = array<i64: 4, 128>}, {transform_indices = @transform_1, window_bounds = array<i64: 4, 128>}, {transform_indices = @transform_2, window_bounds = array<i64: 2, 4, 4>}, {transform_indices = @transform_3, window_bounds = array<i64: 2>}]} {
    %c0_i32 = arith.constant 0 : i32
    %0 = arith.cmpi eq, %arg0, %c0_i32 : i32
    %1 = arith.extui %0 : i1 to i32
    %c0_i32_0 = arith.constant 0 : i32
    %2 = arith.cmpi ne, %1, %c0_i32_0 : i32
    scf.if %2 {
      %cst_36 = arith.constant 0.000000e+00 : f32
      %c0_37 = arith.constant 0 : index
      %88 = memref.load %arg5[%c0_37] : memref<2xf32, #tpu.memory_space<smem>>
      memref.store %cst_36, %arg5[%c0_37] : memref<2xf32, #tpu.memory_space<smem>>
      %cst_38 = arith.constant 0.000000e+00 : f32
      %c1_39 = arith.constant 1 : index
      %89 = memref.load %arg5[%c1_39] : memref<2xf32, #tpu.memory_space<smem>>
      memref.store %cst_38, %arg5[%c1_39] : memref<2xf32, #tpu.memory_space<smem>>
    } else {
    }
    %c0 = arith.constant 0 : index
    %c0_1 = arith.constant 0 : index
    %3 = vector.load %arg1[%c0, %c0_1] : memref<4x128xf32, #tpu.memory_space<vmem>>, vector<4x128xf32>
    %4 = math.tanh %3 : vector<4x128xf32>
    %5 = vector.extract_strided_slice %4 {offsets = [0, 0], sizes = [4, 32], strides = [1, 1]} : vector<4x128xf32> to vector<4x32xf32>
    %cst = arith.constant dense<0.000000e+00> : vector<4xf32>
    %6 = vector.multi_reduction <add>, %5, %cst [1] : vector<4x32xf32> to vector<4xf32>
    %7 = vector.shape_cast %6 : vector<4xf32> to vector<4x1xf32>
    %8 = vector.extract_strided_slice %4 {offsets = [0, 32], sizes = [4, 32], strides = [1, 1]} : vector<4x128xf32> to vector<4x32xf32>
    %cst_2 = arith.constant dense<0.000000e+00> : vector<4xf32>
    %9 = vector.multi_reduction <add>, %8, %cst_2 [1] : vector<4x32xf32> to vector<4xf32>
    %10 = vector.shape_cast %9 : vector<4xf32> to vector<4x1xf32>
    %11 = vector.extract_strided_slice %4 {offsets = [0, 64], sizes = [4, 32], strides = [1, 1]} : vector<4x128xf32> to vector<4x32xf32>
    %cst_3 = arith.constant dense<0.000000e+00> : vector<4xf32>
    %12 = vector.multi_reduction <add>, %11, %cst_3 [1] : vector<4x32xf32> to vector<4xf32>
    %13 = vector.shape_cast %12 : vector<4xf32> to vector<4x1xf32>
    %14 = vector.extract_strided_slice %4 {offsets = [0, 96], sizes = [4, 32], strides = [1, 1]} : vector<4x128xf32> to vector<4x32xf32>
    %cst_4 = arith.constant dense<0.000000e+00> : vector<4xf32>
    %15 = vector.multi_reduction <add>, %14, %cst_4 [1] : vector<4x32xf32> to vector<4xf32>
    %16 = vector.shape_cast %15 : vector<4xf32> to vector<4x1xf32>
    %17 = tpu.concatenate %7, %10, %13, %16 in 1 : vector<4x1xf32>, vector<4x1xf32>, vector<4x1xf32>, vector<4x1xf32> -> vector<4x4xf32>
    %cst_5 = arith.constant 3.125000e-02 : f32
    %18 = vector.broadcast %cst_5 : f32 to vector<4x4xf32>
    %19 = arith.mulf %17, %18 : vector<4x4xf32>
    %c0_6 = arith.constant 0 : index
    %c0_7 = arith.constant 0 : index
    %20 = vector.load %arg2[%c0_6, %c0_7] : memref<4x128xf32, #tpu.memory_space<vmem>>, vector<4x128xf32>
    %21 = math.tanh %20 : vector<4x128xf32>
    %22 = vector.extract_strided_slice %21 {offsets = [0, 0], sizes = [4, 32], strides = [1, 1]} : vector<4x128xf32> to vector<4x32xf32>
    %cst_8 = arith.constant dense<0.000000e+00> : vector<4xf32>
    %23 = vector.multi_reduction <add>, %22, %cst_8 [1] : vector<4x32xf32> to vector<4xf32>
    %24 = vector.shape_cast %23 : vector<4xf32> to vector<4x1xf32>
    %25 = vector.extract_strided_slice %21 {offsets = [0, 32], sizes = [4, 32], strides = [1, 1]} : vector<4x128xf32> to vector<4x32xf32>
    %cst_9 = arith.constant dense<0.000000e+00> : vector<4xf32>
    %26 = vector.multi_reduction <add>, %25, %cst_9 [1] : vector<4x32xf32> to vector<4xf32>
    %27 = vector.shape_cast %26 : vector<4xf32> to vector<4x1xf32>
    %28 = vector.extract_strided_slice %21 {offsets = [0, 64], sizes = [4, 32], strides = [1, 1]} : vector<4x128xf32> to vector<4x32xf32>
    %cst_10 = arith.constant dense<0.000000e+00> : vector<4xf32>
    %29 = vector.multi_reduction <add>, %28, %cst_10 [1] : vector<4x32xf32> to vector<4xf32>
    %30 = vector.shape_cast %29 : vector<4xf32> to vector<4x1xf32>
    %31 = vector.extract_strided_slice %21 {offsets = [0, 96], sizes = [4, 32], strides = [1, 1]} : vector<4x128xf32> to vector<4x32xf32>
    %cst_11 = arith.constant dense<0.000000e+00> : vector<4xf32>
    %32 = vector.multi_reduction <add>, %31, %cst_11 [1] : vector<4x32xf32> to vector<4xf32>
    %33 = vector.shape_cast %32 : vector<4xf32> to vector<4x1xf32>
    %34 = tpu.concatenate %24, %27, %30, %33 in 1 : vector<4x1xf32>, vector<4x1xf32>, vector<4x1xf32>, vector<4x1xf32> -> vector<4x4xf32>
    %cst_12 = arith.constant 3.125000e-02 : f32
    %35 = vector.broadcast %cst_12 : f32 to vector<4x4xf32>
    %36 = arith.mulf %34, %35 : vector<4x4xf32>
    %c0_13 = arith.constant 0 : index
    %37 = memref.load %arg5[%c0_13] : memref<2xf32, #tpu.memory_space<smem>>
    %c0_14 = arith.constant 0 : index
    %c0_15 = arith.constant 0 : index
    %c0_16 = arith.constant 0 : index
    %38 = vector.load %arg3[%c0_14, %c0_15, %c0_16] : memref<2x4x4xf32, #tpu.memory_space<vmem>>, vector<1x4x4xf32>
    %39 = vector.shape_cast %38 : vector<1x4x4xf32> to vector<4x4xf32>
    %40 = math.log %19 : vector<4x4xf32>
    %cst_17 = arith.constant -1.000000e+02 : f32
    %41 = vector.broadcast %cst_17 : f32 to vector<4x4xf32>
    %42 = arith.maximumf %40, %41 : vector<4x4xf32>
    %cst_18 = arith.constant 1.000000e+00 : f32
    %43 = vector.broadcast %cst_18 : f32 to vector<4x4xf32>
    %44 = arith.subf %43, %19 : vector<4x4xf32>
    %45 = math.log %44 : vector<4x4xf32>
    %cst_19 = arith.constant -1.000000e+02 : f32
    %46 = vector.broadcast %cst_19 : f32 to vector<4x4xf32>
    %47 = arith.maximumf %45, %46 : vector<4x4xf32>
    %48 = arith.mulf %39, %42 : vector<4x4xf32>
    %cst_20 = arith.constant 1.000000e+00 : f32
    %49 = vector.broadcast %cst_20 : f32 to vector<4x4xf32>
    %50 = arith.subf %49, %39 : vector<4x4xf32>
    %51 = arith.mulf %50, %47 : vector<4x4xf32>
    %52 = arith.addf %48, %51 : vector<4x4xf32>
    %cst_21 = arith.constant 0.000000e+00 : f32
    %53 = vector.broadcast %cst_21 : f32 to vector<4x4xf32>
    %54 = arith.subf %53, %52 : vector<4x4xf32>
    %55 = vector.shape_cast %54 : vector<4x4xf32> to vector<1x4x4xf32>
    %cst_22 = arith.constant dense<0.000000e+00> : vector<1xf32>
    %56 = vector.multi_reduction <add>, %55, %cst_22 [1, 2] : vector<1x4x4xf32> to vector<1xf32>
    %57 = vector.shape_cast %56 : vector<1xf32> to vector<1x1x1xf32>
    %58 = vector.extract %57[0, 0, 0] : f32 from vector<1x1x1xf32>
    %59 = arith.addf %37, %58 : f32
    %c0_23 = arith.constant 0 : index
    %60 = memref.load %arg5[%c0_23] : memref<2xf32, #tpu.memory_space<smem>>
    memref.store %59, %arg5[%c0_23] : memref<2xf32, #tpu.memory_space<smem>>
    %c1 = arith.constant 1 : index
    %61 = memref.load %arg5[%c1] : memref<2xf32, #tpu.memory_space<smem>>
    %c1_24 = arith.constant 1 : index
    %c0_25 = arith.constant 0 : index
    %c0_26 = arith.constant 0 : index
    %62 = vector.load %arg3[%c1_24, %c0_25, %c0_26] : memref<2x4x4xf32, #tpu.memory_space<vmem>>, vector<1x4x4xf32>
    %63 = vector.shape_cast %62 : vector<1x4x4xf32> to vector<4x4xf32>
    %64 = math.log %36 : vector<4x4xf32>
    %cst_27 = arith.constant -1.000000e+02 : f32
    %65 = vector.broadcast %cst_27 : f32 to vector<4x4xf32>
    %66 = arith.maximumf %64, %65 : vector<4x4xf32>
    %cst_28 = arith.constant 1.000000e+00 : f32
    %67 = vector.broadcast %cst_28 : f32 to vector<4x4xf32>
    %68 = arith.subf %67, %36 : vector<4x4xf32>
    %69 = math.log %68 : vector<4x4xf32>
    %cst_29 = arith.constant -1.000000e+02 : f32
    %70 = vector.broadcast %cst_29 : f32 to vector<4x4xf32>
    %71 = arith.maximumf %69, %70 : vector<4x4xf32>
    %72 = arith.mulf %63, %66 : vector<4x4xf32>
    %cst_30 = arith.constant 1.000000e+00 : f32
    %73 = vector.broadcast %cst_30 : f32 to vector<4x4xf32>
    %74 = arith.subf %73, %63 : vector<4x4xf32>
    %75 = arith.mulf %74, %71 : vector<4x4xf32>
    %76 = arith.addf %72, %75 : vector<4x4xf32>
    %cst_31 = arith.constant 0.000000e+00 : f32
    %77 = vector.broadcast %cst_31 : f32 to vector<4x4xf32>
    %78 = arith.subf %77, %76 : vector<4x4xf32>
    %79 = vector.shape_cast %78 : vector<4x4xf32> to vector<1x4x4xf32>
    %cst_32 = arith.constant dense<0.000000e+00> : vector<1xf32>
    %80 = vector.multi_reduction <add>, %79, %cst_32 [1, 2] : vector<1x4x4xf32> to vector<1xf32>
    %81 = vector.shape_cast %80 : vector<1xf32> to vector<1x1x1xf32>
    %82 = vector.extract %81[0, 0, 0] : f32 from vector<1x1x1xf32>
    %83 = arith.addf %61, %82 : f32
    %c1_33 = arith.constant 1 : index
    %84 = memref.load %arg5[%c1_33] : memref<2xf32, #tpu.memory_space<smem>>
    memref.store %83, %arg5[%c1_33] : memref<2xf32, #tpu.memory_space<smem>>
    %c0_i32_34 = arith.constant 0 : i32
    %85 = arith.cmpi eq, %arg0, %c0_i32_34 : i32
    %86 = arith.extui %85 : i1 to i32
    %c0_i32_35 = arith.constant 0 : i32
    %87 = arith.cmpi ne, %86, %c0_i32_35 : i32
    scf.if %87 {
      %c0_36 = arith.constant 0 : index
      %88 = memref.load %arg5[%c0_36] : memref<2xf32, #tpu.memory_space<smem>>
      %cst_37 = arith.constant 6.250000e-02 : f32
      %89 = arith.mulf %88, %cst_37 : f32
      %c0_38 = arith.constant 0 : index
      %90 = memref.load %arg4[%c0_38] : memref<2xf32, #tpu.memory_space<smem>>
      memref.store %89, %arg4[%c0_38] : memref<2xf32, #tpu.memory_space<smem>>
      %c1_39 = arith.constant 1 : index
      %91 = memref.load %arg5[%c1_39] : memref<2xf32, #tpu.memory_space<smem>>
      %cst_40 = arith.constant 6.250000e-02 : f32
      %92 = arith.mulf %91, %cst_40 : f32
      %c1_41 = arith.constant 1 : index
      %93 = memref.load %arg4[%c1_41] : memref<2xf32, #tpu.memory_space<smem>>
      memref.store %92, %arg4[%c1_41] : memref<2xf32, #tpu.memory_space<smem>>
    } else {
    }
    return
  }
  func.func @transform_0(%arg0: i32) -> (i32, i32) {
    %c0_i32 = arith.constant 0 : i32
    %c0_i32_0 = arith.constant 0 : i32
    return %arg0, %c0_i32 : i32, i32
  }
  func.func @transform_1(%arg0: i32) -> (i32, i32) {
    %c0_i32 = arith.constant 0 : i32
    %c0_i32_0 = arith.constant 0 : i32
    return %arg0, %c0_i32 : i32, i32
  }
  func.func @transform_2(%arg0: i32) -> (i32, i32, i32) {
    %c0_i32 = arith.constant 0 : i32
    %c0_i32_0 = arith.constant 0 : i32
    %c0_i32_1 = arith.constant 0 : i32
    return %c0_i32, %arg0, %c0_i32_0 : i32, i32, i32
  }
  func.func @transform_3(%arg0: i32) -> i32 {
    %c0_i32 = arith.constant 0 : i32
    %c0_i32_0 = arith.constant 0 : i32
    return %c0_i32 : i32
  }
}

</mosaic_0001>

<bundles_post_ra>
// kernel: tpu_custom_call.1
= control target key start
LH: loop header
LB: loop body
LE: loop exit
PB: predicated region body
PF: predicated region fallthrough
CT: control target
= control target key end

     0   :  { %8 = vsyncpa [#allocation4], 0  ;;  %s374_s0 = inlined_call_operand.hbm [shape: f32[4,128], index: 0, kind: input, shape index: {}]   ;;  %s375_s1 = inlined_call_operand.hbm [shape: f32[4,128], index: 1, kind: input, shape index: {}]   ;;  %s376_s2 = inlined_call_operand.hbm [shape: f32[2,4,4], index: 2, kind: input, shape index: {}]   ;;  %s377_s3 = inlined_call_operand.hbm [shape: f32[2], index: 3, kind: output, shape index: {}]  }
   0x1   :  { %9 = vsyncpa [#allocation7], 0  ;;  %s27_s14 = sshll.u32 %s375_s1, 4  ;;  %s28_s14 = int_to_ptr.hbm [resolvable:$true] %s27_s14 }
   0x2   :  { %10 = vsyncpa [#allocation5], 0  ;;  %s326_s15 = smov [#allocation6]   ;;  %s16_s19 = sshll.u32 %s374_s0, 4  ;;  %s17_s19 = int_to_ptr.hbm [resolvable:$true] %s16_s19 }
   0x3   :  { %s29_s16 = sshll.u32 %s326_s15, 4  ;;  %s327_s20 = smov [#allocation3]   ;;  %s30_s16 = int_to_ptr.vmem [resolvable:$true] %s29_s16 }
   0x4   :  { %32 = dma.hbm_to_vmem [thread:$0]  %s28_s14, 64, %s30_s16, [#allocation7]  }
   0x5   :  { %s18_s21 = sshll.u32 %s327_s20, 4  ;;  %s37_s24 = sshll.u32 %s376_s2, 4  ;;  %s19_s21 = int_to_ptr.vmem [resolvable:$true] %s18_s21  ;;  %s38_s24 = int_to_ptr.hbm [resolvable:$true] %s37_s24 }
   0x6   :  { %21 = dma.hbm_to_vmem [thread:$0]  %s17_s19, 64, %s19_s21, [#allocation4]  }
   0x7   :  { %s328_s1 = smov [#allocation8]   ;;  %s329_s26 = smov 64  }
   0x8   :  { %s39_s25 = sshll.u32 %s328_s1, 4  ;;  %s330_s27 = smov 4   ;;  %s40_s25 = int_to_ptr.vmem [resolvable:$true] %s39_s25 }
   0x9   :  { %45 = dma.hbm_to_vmem [thread:$0]  %s38_s24, 128, %s40_s25, [#allocation7], %s329_s26, %s329_s26, %s330_s27  }
   0xa   :  { %320 = dma.done.wait [#allocation4], 64  }
   0xb   :  { %321 = vsyncadd [#allocation4], 4294967232 }
   0xc   :  { %322 = dma.done.wait [#allocation7], 192  }
   0xd   :  { %323 = vsyncadd [#allocation7], 4294967104  ;;  %v66_v0 = vld [vmem:[#allocation3] sm:$0xf]  ;;  %v98_v1 = vld [vmem:[#allocation6] sm:$0xf] }
   0xe   :  { %224 = vtanh.f32 %v66_v0  ;;  %s331_s0 = smov 96   ;;  %s332_s2 = smov 32   ;;  %vm68_vm0 = vcmask 257024   ;;  %vm91_vm1 = vcmask 7168   ;;  %vm95_vm2 = vcmask 23552  }
   0xf   :  { %226 = vtanh.f32 %v98_v1  ;;  %vm93_vm3 = vcmask 15360   ;;  %v156_v37 = vld [vmem:[#allocation8 + $0x4] sm:$0xf]  ;;  %v127_v45 = vld [vmem:[#allocation8] sm:$0xf]  ;;  %vm140_vm4 = vcmask 27648  }
  0x10   :  { %v165_v42 = vsub.f32 1.0, %v156_v37  ;;  %v136_v53 = vsub.f32 1.0, %v127_v45  ;;  %s198_s30 = sshll.u32 %s377_s3, 4  ;;  %s333_s8 = smov [#allocation9]   ;;  %s199_s30 = int_to_ptr.hbm [resolvable:$true] %s198_s30 }
  0x14   :  { %v225_v2 = vpop.eup %224 }
  0x15   :  { %73 = vrot.lane.b32.xlu0 %v225_v2, %s331_s0  ;;  %79 = vrot.lane.b32.xlu1 %v225_v2, %s329_s26  ;;  %v227_v3 = vpop.eup %226  ;;  %v69_v4 = vsel %vm68_vm0, %v225_v2, 0.0 }
  0x16   :  { %85 = vrot.lane.b32.xlu2 %v225_v2, %s332_s2  ;;  %v100_v5 = vsel %vm68_vm0, %v227_v3, 0.0 }
  0x1d   :  { %104 = vrot.lane.b32.xlu0 %v227_v3, %s331_s0  ;;  %110 = vrot.lane.b32.xlu1 %v227_v3, %s329_s26 }
  0x1e   :  { %116 = vrot.lane.b32.xlu2 %v227_v3, %s332_s2 }
  0x47   :  { %70 = vadd.xlane.f32.xlu0 %v69_v4  ;;  %101 = vadd.xlane.f32.xlu2 %v100_v5 }
  0x70   :  { %v86_v6 = vpop.permute.xlu2 %85 }
  0x71   :  { %v88_v17 = vsel %vm68_vm0, %v86_v6, 0.0 }
  0x78   :  { %v117_v11 = vpop.permute.xlu2 %116 }
  0x79   :  { %v119_v14 = vsel %vm68_vm0, %v117_v11, 0.0 }
  0x87   :  { %v74_v7 = vpop.permute.xlu0 %73  ;;  %v80_v8 = vpop.permute.xlu1 %79 }
  0x88   :  { %v76_v9 = vsel %vm68_vm0, %v74_v7, 0.0  ;;  %v82_v10 = vsel %vm68_vm0, %v80_v8, 0.0 }
  0x89   :  { %77 = vadd.xlane.f32.xlu1 %v76_v9  ;;  %83 = vadd.xlane.f32.xlu0 %v82_v10 }
  0x8f   :  { %v105_v12 = vpop.permute.xlu0 %104  ;;  %v111_v13 = vpop.permute.xlu1 %110 }
  0x90   :  { %v107_v15 = vsel %vm68_vm0, %v105_v12, 0.0  ;;  %v113_v16 = vsel %vm68_vm0, %v111_v13, 0.0 }
  0x91   :  { %108 = vadd.xlane.f32.xlu2 %v107_v15  ;;  %114 = vadd.xlane.f32.xlu1 %v113_v16 }
  0x92   :  { %120 = vadd.xlane.f32.xlu0 %v119_v14 }
  0x99   :  { %89 = vadd.xlane.f32.xlu2 %v88_v17 }
  0xba   :  { %v71_v18 = vpop.xlane.xlu0 %70  ;;  %v102_v19 = vpop.xlane.xlu2 %101 }
  0xfc   :  { %v78_v20 = vpop.xlane.xlu1 %77  ;;  %v84_v21 = vpop.xlane.xlu0 %83 }
  0xfd   :  { %v92_v29 = vsel %vm91_vm1, %v71_v18, %v78_v20 }
  0xfe   :  { %v94_v31 = vsel %vm93_vm3, %v92_v29, %v84_v21 }
 0x104   :  { %v109_v22 = vpop.xlane.xlu2 %108  ;;  %v115_v23 = vpop.xlane.xlu1 %114 }
 0x105   :  { %v122_v24 = vsel %vm91_vm1, %v102_v19, %v109_v22  ;;  %v121_v25 = vpop.xlane.xlu0 %120 }
 0x106   :  { %v123_v26 = vsel %vm93_vm3, %v122_v24, %v115_v23 }
 0x107   :  { %v124_v27 = vsel %vm95_vm2, %v123_v26, %v121_v25 }
 0x108   :  { %v125_v28 = vmul.f32 0.03125, %v124_v27 }
 0x10a   :  { %228 = vlog2.f32 %v125_v28  ;;  %v160_v30 = vsub.f32 1.0, %v125_v28 }
 0x10c   :  { %230 = vlog2.f32 %v160_v30  ;;  %v90_v32 = vpop.xlane.xlu2 %89 }
 0x10d   :  { %v96_v33 = vsel %vm95_vm2, %v94_v31, %v90_v32 }
 0x10e   :  { %v97_v34 = vmul.f32 0.03125, %v96_v33 }
 0x110   :  { %v229_v35 = vpop.eup %228  ;;  %232 = vlog2.f32 %v97_v34  ;;  %v131_v36 = vsub.f32 1.0, %v97_v34 }
 0x111   :  { %v158_v38 = vmul.f32 0.6931472, %v229_v35 }
 0x112   :  { %v231_v39 = vpop.eup %230  ;;  %234 = vlog2.f32 %v131_v36 }
 0x113   :  { %v159_v40 = vmax.f32 %v158_v38, -100.0  ;;  %v162_v41 = vmul.f32 0.6931472, %v231_v39 }
 0x115   :  { %v163_v43 = vmax.f32 %v162_v41, -100.0  ;;  %v164_v47 = vmul.f32 %v159_v40, %v156_v37 }
 0x116   :  { %v233_v44 = vpop.eup %232 }
 0x117   :  { %v129_v46 = vmul.f32 0.6931472, %v233_v44  ;;  %v166_v48 = vmul.f32 %v165_v42, %v163_v43 }
 0x118   :  { %v235_v49 = vpop.eup %234 }
 0x119   :  { %v130_v50 = vmax.f32 %v129_v46, -100.0  ;;  %v133_v51 = vmul.f32 0.6931472, %v235_v49  ;;  %v167_v52 = vadd.f32 %v166_v48, %v164_v47 }
 0x11b   :  { %v134_v54 = vmax.f32 %v133_v51, -100.0  ;;  %v168_v55 = vsub.f32 0.0, %v167_v52  ;;  %v135_v57 = vmul.f32 %v130_v50, %v127_v45 }
 0x11d   :  { %v169_v56 = vsel %vm140_vm4, %v168_v55, 0.0  ;;  %v137_v58 = vmul.f32 %v136_v53, %v134_v54 }
 0x11e   :  { %170 = vadd.xlane.f32.xlu2 %v169_v56 }
 0x11f   :  { %v138_v59 = vadd.f32 %v137_v58, %v135_v57 }
 0x121   :  { %v139_v60 = vsub.f32 0.0, %v138_v59 }
 0x123   :  { %v141_v61 = vsel %vm140_vm4, %v139_v60, 0.0 }
 0x124   :  { %142 = vadd.xlane.f32.xlu1 %v141_v61 }
 0x191   :  { %v171_v62 = vpop.xlane.xlu2 %170 }
 0x192   :  { %v172_v63 = vrot.slane %v171_v62, 4 }
 0x194   :  { %v173_v0 = vadd.f32 %v172_v63, %v171_v62 }
 0x196   :  { %v174_v1 = vrot.slane %v173_v0, 2 }
 0x197   :  { %v143_v2 = vpop.xlane.xlu1 %142 }
 0x198   :  { %v144_v3 = vrot.slane %v143_v2, 4  ;;  %v175_v5 = vadd.f32 %v174_v1, %v173_v0 }
 0x19a   :  { %v145_v4 = vadd.f32 %v144_v3, %v143_v2  ;;  %v176_v8 = vrot.slane %v175_v5, 1 }
 0x19c   :  { %v146_v6 = vrot.slane %v145_v4, 2  ;;  %v177_v11 = vadd.f32 %v176_v8, %v175_v5 }
 0x19e   :  { %v147_v7 = vadd.f32 %v146_v6, %v145_v4 }
 0x1a0   :  { %v148_v9 = vrot.slane %v147_v7, 1 }
 0x1a2   :  { %v149_v10 = vadd.f32 %v148_v9, %v147_v7 }
 0x1a4   :  { %212 = vpush %v149_v10 }
 0x1a5   :  { %214 = vpush %v177_v11 }
 0x1d5   :  { %s213_s4 = spop %212 }
 0x1d6   :  { %s186_s5 = smul.f32 0.0625, %s213_s4  ;;  %s215_s6 = spop %214 }
 0x1d7   :  { %s190_s7 = smul.f32 0.0625, %s215_s6 }
 0x1d8   :  { %188 = sst [smem:[#allocation9]] %s186_s5 }
 0x1d9   :  { %192 = sst [smem:[#allocation9 + $0x1]] %s190_s7 }
 0x1da   :  { %201 = dma.smem_to_hbm %s333_s8, 16, %s199_s30, [#allocation5]  }
 0x1db   :  { %324 = dma.done.wait [#allocation5], 16  }
 0x1dc   :  { %325 = vsyncadd [#allocation5], 4294967280 }
 0x1dd   :  { %206 = sfence }
 0x1de   :  { %207 = vsyncpa [#allocation4], 1 }
 0x1df   :  { %208 = vsyncpa [#allocation7], 1 }
 0x1e0   :  { %209 = vsyncpa [#allocation5], 1 }

</bundles_post_ra>
